<compile_context>
chip_gen: v6e
topology: v6e:2x2x1
jax: 0.10.0
libtpu: 0.0.40
codegen_flags: <defaults>
</compile_context>

<pallas_src>
import functools

import jax
import jax.numpy as jnp
import numpy as np
from jax.experimental import pallas as pl
from jax.experimental.pallas import tpu as pltpu


# ----------------------------------------------------------------------------
# Pallas kernel: one grid step handles Rt sequences (M = Rt * (N-1) rows)
#   x      = onehot(src) @ emb                      (in-kernel gather, bf16 MXU)
#   h      = gelu(x @ W1 + b1)                      (f32 accum, f32 VPU/EUP)
#   logits = h @ Wout                               (bf16 MXU, f32 accum)
#   logp   = log_softmax(logits)[tgt]               (one-hot lane compare)
#   out    = per-sequence masked mean               (segment one-hot matmul)
# ----------------------------------------------------------------------------
def _dpo_logprob_kernel(src_ref, tgt_ref, mask_ref, emb_ref, w1_ref, b1_ref,
                        wo_ref, out_ref):
    M = src_ref.shape[1]          # Rt * (N-1) fused rows
    Rt = out_ref.shape[1]         # sequences per grid step
    nm1 = M // Rt                 # N - 1
    V = wo_ref.shape[1]

    src = src_ref[0]                                             # [M, 1] int32
    vids = jax.lax.broadcasted_iota(jnp.int32, (M, V), 1)        # lane iota

    # in-kernel embedding gather: exact row-select via one-hot bf16 matmul
    onehot = jnp.where(vids == src, 1.0, 0.0).astype(jnp.bfloat16)   # [M, V]
    x = jnp.dot(onehot, emb_ref[...],
                preferred_element_type=jnp.float32).astype(jnp.bfloat16)  # [M, D]

    # hidden layer (bf16 MXU operands, f32 accumulate, f32 nonlinearity)
    h = jnp.dot(x, w1_ref[...], preferred_element_type=jnp.float32) + b1_ref[...]
    h = jax.nn.gelu(h, approximate=True)                         # [M, D] f32

    # vocab projection
    logits = jnp.dot(h.astype(jnp.bfloat16), wo_ref[...],
                     preferred_element_type=jnp.float32)         # [M, V] f32

    # numerically stable log-softmax denominator + target-token gather
    m = jnp.max(logits, axis=-1, keepdims=True)                  # [M, 1]
    lse = m + jnp.log(jnp.sum(jnp.exp(logits - m), axis=-1, keepdims=True))
    tgt_logit = jnp.sum(jnp.where(vids == tgt_ref[0], logits, 0.0),
                        axis=-1, keepdims=True)                  # [M, 1]

    msk = mask_ref[0]                                            # [M, 1] f32
    logp_w = (tgt_logit - lse) * msk                             # [M, 1]

    # per-sequence masked mean: segment one-hot [Rt, M] matmul (MXU), no
    # sublane<->lane relayouts.  seg[r, i] = 1 iff row i belongs to sequence r.
    r_idx = jax.lax.broadcasted_iota(jnp.int32, (Rt, M), 0)
    c_idx = jax.lax.broadcasted_iota(jnp.int32, (Rt, M), 1)
    lower = r_idx * nm1
    seg = jnp.where((c_idx >= lower) & (c_idx < lower + nm1), 1.0, 0.0)

    num = jnp.dot(seg, logp_w, preferred_element_type=jnp.float32)   # [Rt, 1]
    den = jnp.dot(seg, msk, preferred_element_type=jnp.float32)      # [Rt, 1]
    out_ref[...] = (num / jnp.maximum(den, 1e-5)).reshape(1, Rt, 1)


def _row_tile(num_rows, nm1, target_m=512):
    """Largest divisor rt of num_rows with rt * nm1 <= max(target_m, nm1)."""
    best = 1
    cap = max(target_m, nm1)
    for rt in range(1, num_rows + 1):
        if num_rows % rt == 0 and rt * nm1 <= cap:
            best = rt
    return best


def seq_masked_logprob(params, seq, combined_mask, *, target_m=512):
    """log_prob_from_model_and_seq + masked_mean, fused in one Pallas kernel.

    seq:           [R, N] int32 tokens (R may be pref+unpref concatenated)
    combined_mask: [R, N] bool  (already ~prompt_mask & seq_mask)
    returns:       [R] f32 masked-mean target log-probability
    """
    R, N = seq.shape
    nm1 = N - 1
    src = seq[:, :-1].astype(jnp.int32)
    tgt = seq[:, 1:].astype(jnp.int32)
    msk = combined_mask[:, :-1].astype(jnp.float32)

    D = params["w1"].shape[0]
    V = params["wo"].shape[1]

    rt = _row_tile(R, nm1, target_m)     # sequences per grid step
    S = R // rt                          # grid steps
    M = rt * nm1                         # fused matmul M dimension

    # contiguous (free) wrapper-side reshapes; columns stay pre-shaped so the
    # kernel never needs a sublane<->lane relayout.  Every BlockSpec below has
    # full-extent last-two dims, so the (8,128) divisibility rule never bites.
    src3 = src.reshape(S, M, 1)
    tgt3 = tgt.reshape(S, M, 1)
    msk3 = msk.reshape(S, M, 1)

    # bf16 MXU operands (f32 accumulation inside the kernel)
    emb_bf = params["emb"].astype(jnp.bfloat16)
    w1_bf = params["w1"].astype(jnp.bfloat16)
    wo_bf = params["wo"].astype(jnp.bfloat16)
    b1_f32 = params["b1"].astype(jnp.float32)

    out = pl.pallas_call(
        _dpo_logprob_kernel,
        out_shape=jax.ShapeDtypeStruct((S, rt, 1), jnp.float32),
        grid_spec=pltpu.PrefetchScalarGridSpec(
            num_scalar_prefetch=0,
            grid=(S,),
            in_specs=[
                pl.BlockSpec((1, M, 1), lambda s: (s, 0, 0)),   # src tokens
                pl.BlockSpec((1, M, 1), lambda s: (s, 0, 0)),   # tgt tokens
                pl.BlockSpec((1, M, 1), lambda s: (s, 0, 0)),   # mask
                pl.BlockSpec((V, D), lambda s: (0, 0)),         # emb (VMEM-resident)
                pl.BlockSpec((D, D), lambda s: (0, 0)),         # W1
                pl.BlockSpec((1, D), lambda s: (0, 0)),         # b1
                pl.BlockSpec((D, V), lambda s: (0, 0)),         # Wout
            ],
            out_specs=pl.BlockSpec((1, rt, 1), lambda s: (s, 0, 0)),
        ),
        compiler_params=pltpu.CompilerParams(
            dimension_semantics=("parallel",)),                 # v7x: 2 TCs split rows
    )(src3, tgt3, msk3, emb_bf, w1_bf, b1_f32, wo_bf)
    return out.reshape(R)


# ----------------------------------------------------------------------------
# DPO forward pass: 2 kernel launches (policy, ref), pref+unpref fused per call
# ----------------------------------------------------------------------------
@functools.partial(jax.jit, static_argnames=("beta", "pad_id"))
def dpo_forward(policy_params, ref_params, preferred_seq, unpreferred_seq,
                prompt_mask, *, beta=0.1, pad_id=0):
    B = preferred_seq.shape[0]

    # pad_id -> sequence masks; maybe_and_mask(~prompt_mask, seq_mask)
    pref_mask = jnp.logical_and(~prompt_mask, preferred_seq != pad_id)
    unpref_mask = jnp.logical_and(~prompt_mask, unpreferred_seq != pad_id)

    # fuse preferred + unpreferred along batch: one kernel launch per model
    seq_all = jnp.concatenate([preferred_seq, unpreferred_seq], axis=0)    # [2B, N]
    mask_all = jnp.concatenate([pref_mask, unpref_mask], axis=0)           # [2B, N]

    ref_lp = seq_masked_logprob(ref_params, seq_all, mask_all)      # [2B]
    pol_lp = seq_masked_logprob(policy_params, seq_all, mask_all)   # [2B]

    ref_pref, ref_unpref = ref_lp[:B], ref_lp[B:]
    pol_pref, pol_unpref = pol_lp[:B], pol_lp[B:]

    policy_logratios = pol_pref - pol_unpref
    ref_logratios = ref_pref - ref_unpref
    losses = -jax.nn.log_sigmoid(beta * (policy_logratios - ref_logratios))
    return losses.mean()


# ----------------------------------------------------------------------------
# Pure-JAX reference (same bf16 operand / f32 accumulate convention)
# ----------------------------------------------------------------------------
def _ref_seq_masked_logprob(params, seq, combined_mask):
    src, tgt = seq[:, :-1], seq[:, 1:]
    emb = params["emb"].astype(jnp.bfloat16)
    w1 = params["w1"].astype(jnp.bfloat16)
    wo = params["wo"].astype(jnp.bfloat16)
    x = emb[src]                                                          # bf16
    h = jnp.dot(x, w1, preferred_element_type=jnp.float32) + params["b1"]
    h = jax.nn.gelu(h, approximate=True)
    logits = jnp.dot(h.astype(jnp.bfloat16), wo,
                     preferred_element_type=jnp.float32)
    logp = jax.nn.log_softmax(logits, axis=-1)
    lp = jnp.take_along_axis(logp, tgt[..., None].astype(jnp.int32), axis=-1)[..., 0]
    m = combined_mask[:, :-1].astype(jnp.float32)
    return (lp * m).sum(-1) / jnp.maximum(m.sum(-1), 1e-5)


def _ref_dpo(policy_params, ref_params, pref, unpref, prompt_mask, beta, pad_id):
    pm = jnp.logical_and(~prompt_mask, pref != pad_id)
    um = jnp.logical_and(~prompt_mask, unpref != pad_id)
    rp = _ref_seq_masked_logprob(ref_params, pref, pm)
    ru = _ref_seq_masked_logprob(ref_params, unpref, um)
    pp = _ref_seq_masked_logprob(policy_params, pref, pm)
    pu = _ref_seq_masked_logprob(policy_params, unpref, um)
    losses = -jax.nn.log_sigmoid(beta * ((pp - pu) - (rp - ru)))
    return losses.mean()


# ----------------------------------------------------------------------------
if __name__ == "__main__":
    B, N, D, V = 2, 8, 32, 128
    beta, pad_id = 0.1, 0

    key = jax.random.PRNGKey(0)
    k_emb, k_w1, k_b1, k_wo, k_pol, k_pref, k_unpref = jax.random.split(key, 7)

    # deterministic synthetic TransformerWrapper parameters (ref = frozen copy)
    ref_params = {
        "emb": 0.02 * jax.random.normal(k_emb, (V, D), jnp.float32),
        "w1": jax.random.normal(k_w1, (D, D), jnp.float32) / np.sqrt(D),
        "b1": 0.01 * jax.random.normal(k_b1, (1, D), jnp.float32),
        "wo": jax.random.normal(k_wo, (D, V), jnp.float32) / np.sqrt(D),
    }
    # policy = deepcopy(ref) at init + a few simulated optimizer steps
    policy_params = dict(ref_params)
    policy_params["wo"] = ref_params["wo"] + 0.05 * jax.random.normal(
        k_pol, (D, V), jnp.float32)

    # token sequences (avoid pad_id=0 mostly, add one pad to exercise the mask)
    preferred_seq = jax.random.randint(k_pref, (B, N), 1, V, dtype=jnp.int32)
    unpreferred_seq = jax.random.randint(k_unpref, (B, N), 1, V, dtype=jnp.int32)
    unpreferred_seq = unpreferred_seq.at[0, N - 1].set(pad_id)

    # prompt covers the first 3 positions
    prompt_mask = jnp.arange(N)[None, :] < 3
    prompt_mask = jnp.broadcast_to(prompt_mask, (B, N))

    loss = dpo_forward(policy_params, ref_params, preferred_seq, unpreferred_seq,
                       prompt_mask, beta=beta, pad_id=pad_id)
    loss = jax.block_until_ready(loss)

    # sanity check against a pure-JAX reference
    ref_loss = _ref_dpo(policy_params, ref_params, preferred_seq, unpreferred_seq,
                        prompt_mask, beta, pad_id)
    np.testing.assert_allclose(np.asarray(loss), np.asarray(ref_loss),
                               rtol=2e-3, atol=2e-4)

    print("KERNEL_OK")
</pallas_src>

<mosaic_0001>
module attributes {stable_mosaic.version = 11 : i64} {
  func.func @_dpo_logprob_kernel(%arg0: i32, %arg1: memref<1x28x1xi32, #tpu.memory_space<vmem>>, %arg2: memref<1x28x1xi32, #tpu.memory_space<vmem>>, %arg3: memref<1x28x1xf32, #tpu.memory_space<vmem>>, %arg4: memref<128x32xbf16, #tpu.memory_space<vmem>>, %arg5: memref<32x32xbf16, #tpu.memory_space<vmem>>, %arg6: memref<1x32xf32, #tpu.memory_space<vmem>>, %arg7: memref<32x128xbf16, #tpu.memory_space<vmem>>, %arg8: memref<1x4x1xf32, #tpu.memory_space<vmem>>) attributes {dimension_semantics = [#tpu.dimension_semantics<parallel>], iteration_bounds = array<i64: 1>, scalar_prefetch = 0 : i64, scratch_operands = 0 : i64, tpu.core_type = #tpu.core_type<tc>, window_params = [{transform_indices = @transform_0, window_bounds = array<i64: 1, 28, 1>}, {transform_indices = @transform_1, window_bounds = array<i64: 1, 28, 1>}, {transform_indices = @transform_2, window_bounds = array<i64: 1, 28, 1>}, {pipeline_mode = #tpu.pipeline_mode<synchronous>, transform_indices = @transform_3, window_bounds = array<i64: 128, 32>}, {pipeline_mode = #tpu.pipeline_mode<synchronous>, transform_indices = @transform_4, window_bounds = array<i64: 32, 32>}, {pipeline_mode = #tpu.pipeline_mode<synchronous>, transform_indices = @transform_5, window_bounds = array<i64: 1, 32>}, {pipeline_mode = #tpu.pipeline_mode<synchronous>, transform_indices = @transform_6, window_bounds = array<i64: 32, 128>}, {transform_indices = @transform_7, window_bounds = array<i64: 1, 4, 1>}]} {
    %c0 = arith.constant 0 : index
    %c0_0 = arith.constant 0 : index
    %c0_1 = arith.constant 0 : index
    %0 = vector.load %arg1[%c0, %c0_0, %c0_1] : memref<1x28x1xi32, #tpu.memory_space<vmem>>, vector<1x28x1xi32>
    %1 = vector.shape_cast %0 : vector<1x28x1xi32> to vector<28x1xi32>
    %2 = tpu.iota {dimensions = array<i32: 1>} : vector<28x128xi32>
    %3 = vector.broadcast %1 : vector<28x1xi32> to vector<28x128xi32>
    %4 = arith.cmpi eq, %2, %3 : vector<28x128xi32>
    %cst = arith.constant 1.000000e+00 : f32
    %cst_2 = arith.constant 0.000000e+00 : f32
    %5 = vector.broadcast %cst : f32 to vector<28x128xf32>
    %6 = vector.broadcast %cst_2 : f32 to vector<28x128xf32>
    %7 = arith.select %4, %5, %6 : vector<28x128xi1>, vector<28x128xf32>
    %8 = arith.truncf %7 : vector<28x128xf32> to vector<28x128xbf16>
    %c0_3 = arith.constant 0 : index
    %c0_4 = arith.constant 0 : index
    %9 = vector.load %arg4[%c0_3, %c0_4] : memref<128x32xbf16, #tpu.memory_space<vmem>>, vector<128x32xbf16>
    %cst_5 = arith.constant dense<0.000000e+00> : vector<28x32xf32>
    %10 = tpu.matmul %8, %9, %cst_5 {dimension_numbers = #tpu.dot_dimension_numbers<[1], [0], [0], [1], [0, 0, 1, 1], [], []>} : vector<28x128xbf16>, vector<128x32xbf16>, vector<28x32xf32> -> vector<28x32xf32>
    %11 = arith.truncf %10 : vector<28x32xf32> to vector<28x32xbf16>
    %c0_6 = arith.constant 0 : index
    %c0_7 = arith.constant 0 : index
    %12 = vector.load %arg5[%c0_6, %c0_7] : memref<32x32xbf16, #tpu.memory_space<vmem>>, vector<32x32xbf16>
    %cst_8 = arith.constant dense<0.000000e+00> : vector<28x32xf32>
    %13 = tpu.matmul %11, %12, %cst_8 {dimension_numbers = #tpu.dot_dimension_numbers<[1], [0], [0], [1], [0, 0, 1, 1], [], []>} : vector<28x32xbf16>, vector<32x32xbf16>, vector<28x32xf32> -> vector<28x32xf32>
    %c0_9 = arith.constant 0 : index
    %c0_10 = arith.constant 0 : index
    %14 = vector.load %arg6[%c0_9, %c0_10] : memref<1x32xf32, #tpu.memory_space<vmem>>, vector<1x32xf32>
    %15 = vector.broadcast %14 : vector<1x32xf32> to vector<28x32xf32>
    %16 = arith.addf %13, %15 : vector<28x32xf32>
    %17 = arith.mulf %16, %16 : vector<28x32xf32>
    %18 = arith.mulf %16, %17 : vector<28x32xf32>
    %cst_11 = arith.constant 4.471500e-02 : f32
    %19 = vector.broadcast %cst_11 : f32 to vector<28x32xf32>
    %20 = arith.mulf %19, %18 : vector<28x32xf32>
    %21 = arith.addf %16, %20 : vector<28x32xf32>
    %cst_12 = arith.constant 0.797884583 : f32
    %22 = vector.broadcast %cst_12 : f32 to vector<28x32xf32>
    %23 = arith.mulf %22, %21 : vector<28x32xf32>
    %24 = math.tanh %23 : vector<28x32xf32>
    %cst_13 = arith.constant 1.000000e+00 : f32
    %25 = vector.broadcast %cst_13 : f32 to vector<28x32xf32>
    %26 = arith.addf %25, %24 : vector<28x32xf32>
    %cst_14 = arith.constant 5.000000e-01 : f32
    %27 = vector.broadcast %cst_14 : f32 to vector<28x32xf32>
    %28 = arith.mulf %27, %26 : vector<28x32xf32>
    %29 = arith.mulf %16, %28 : vector<28x32xf32>
    %30 = arith.truncf %29 : vector<28x32xf32> to vector<28x32xbf16>
    %c0_15 = arith.constant 0 : index
    %c0_16 = arith.constant 0 : index
    %31 = vector.load %arg7[%c0_15, %c0_16] : memref<32x128xbf16, #tpu.memory_space<vmem>>, vector<32x128xbf16>
    %cst_17 = arith.constant dense<0.000000e+00> : vector<28x128xf32>
    %32 = tpu.matmul %30, %31, %cst_17 {dimension_numbers = #tpu.dot_dimension_numbers<[1], [0], [0], [1], [0, 0, 1, 1], [], []>} : vector<28x32xbf16>, vector<32x128xbf16>, vector<28x128xf32> -> vector<28x128xf32>
    %cst_18 = arith.constant dense<0xFF800000> : vector<28xf32>
    %33 = vector.multi_reduction <maximumf>, %32, %cst_18 [1] : vector<28x128xf32> to vector<28xf32>
    %34 = vector.shape_cast %33 : vector<28xf32> to vector<28x1xf32>
    %35 = vector.broadcast %34 : vector<28x1xf32> to vector<28x128xf32>
    %36 = arith.subf %32, %35 : vector<28x128xf32>
    %37 = math.exp %36 : vector<28x128xf32>
    %cst_19 = arith.constant dense<0.000000e+00> : vector<28xf32>
    %38 = vector.multi_reduction <add>, %37, %cst_19 [1] : vector<28x128xf32> to vector<28xf32>
    %39 = vector.shape_cast %38 : vector<28xf32> to vector<28x1xf32>
    %40 = math.log %39 : vector<28x1xf32>
    %41 = arith.addf %34, %40 : vector<28x1xf32>
    %c0_20 = arith.constant 0 : index
    %c0_21 = arith.constant 0 : index
    %c0_22 = arith.constant 0 : index
    %42 = vector.load %arg2[%c0_20, %c0_21, %c0_22] : memref<1x28x1xi32, #tpu.memory_space<vmem>>, vector<1x28x1xi32>
    %43 = vector.shape_cast %42 : vector<1x28x1xi32> to vector<28x1xi32>
    %44 = vector.broadcast %43 : vector<28x1xi32> to vector<28x128xi32>
    %45 = arith.cmpi eq, %2, %44 : vector<28x128xi32>
    %cst_23 = arith.constant 0.000000e+00 : f32
    %46 = vector.broadcast %cst_23 : f32 to vector<28x128xf32>
    %47 = arith.select %45, %32, %46 : vector<28x128xi1>, vector<28x128xf32>
    %cst_24 = arith.constant dense<0.000000e+00> : vector<28xf32>
    %48 = vector.multi_reduction <add>, %47, %cst_24 [1] : vector<28x128xf32> to vector<28xf32>
    %49 = vector.shape_cast %48 : vector<28xf32> to vector<28x1xf32>
    %c0_25 = arith.constant 0 : index
    %c0_26 = arith.constant 0 : index
    %c0_27 = arith.constant 0 : index
    %50 = vector.load %arg3[%c0_25, %c0_26, %c0_27] : memref<1x28x1xf32, #tpu.memory_space<vmem>>, vector<1x28x1xf32>
    %51 = vector.shape_cast %50 : vector<1x28x1xf32> to vector<28x1xf32>
    %52 = arith.subf %49, %41 : vector<28x1xf32>
    %53 = arith.mulf %52, %51 : vector<28x1xf32>
    %54 = tpu.iota {dimensions = array<i32: 0>} : vector<4x28xi32>
    %55 = tpu.iota {dimensions = array<i32: 1>} : vector<4x28xi32>
    %c7_i32 = arith.constant 7 : i32
    %56 = vector.broadcast %c7_i32 : i32 to vector<4x28xi32>
    %57 = arith.muli %54, %56 : vector<4x28xi32>
    %58 = arith.cmpi sge, %55, %57 : vector<4x28xi32>
    %c7_i32_28 = arith.constant 7 : i32
    %59 = vector.broadcast %c7_i32_28 : i32 to vector<4x28xi32>
    %60 = arith.addi %57, %59 : vector<4x28xi32>
    %61 = arith.cmpi slt, %55, %60 : vector<4x28xi32>
    %62 = arith.andi %58, %61 : vector<4x28xi1>
    %cst_29 = arith.constant 1.000000e+00 : f32
    %cst_30 = arith.constant 0.000000e+00 : f32
    %63 = vector.broadcast %cst_29 : f32 to vector<4x28xf32>
    %64 = vector.broadcast %cst_30 : f32 to vector<4x28xf32>
    %65 = arith.select %62, %63, %64 : vector<4x28xi1>, vector<4x28xf32>
    %cst_31 = arith.constant dense<0.000000e+00> : vector<4x1xf32>
    %66 = tpu.matmul %65, %53, %cst_31 {dimension_numbers = #tpu.dot_dimension_numbers<[1], [0], [0], [1], [0, 0, 1, 1], [], []>} : vector<4x28xf32>, vector<28x1xf32>, vector<4x1xf32> -> vector<4x1xf32>
    %cst_32 = arith.constant dense<0.000000e+00> : vector<4x1xf32>
    %67 = tpu.matmul %65, %51, %cst_32 {dimension_numbers = #tpu.dot_dimension_numbers<[1], [0], [0], [1], [0, 0, 1, 1], [], []>} : vector<4x28xf32>, vector<28x1xf32>, vector<4x1xf32> -> vector<4x1xf32>
    %cst_33 = arith.constant 9.99999974E-6 : f32
    %68 = vector.broadcast %cst_33 : f32 to vector<4x1xf32>
    %69 = arith.maximumf %67, %68 : vector<4x1xf32>
    %70 = arith.divf %66, %69 : vector<4x1xf32>
    %71 = vector.shape_cast %70 : vector<4x1xf32> to vector<1x4x1xf32>
    %c0_34 = arith.constant 0 : index
    %c0_35 = arith.constant 0 : index
    %c0_36 = arith.constant 0 : index
    %72 = vector.load %arg8[%c0_34, %c0_35, %c0_36] : memref<1x4x1xf32, #tpu.memory_space<vmem>>, vector<1x4x1xf32>
    tpu.vector_store %arg8[%c0_34, %c0_35, %c0_36], %71 {strides = array<i32>} : memref<1x4x1xf32, #tpu.memory_space<vmem>>, vector<1x4x1xf32>,
    return
  }
  func.func @transform_0(%arg0: i32) -> (i32, i32, i32) {
    %c0_i32 = arith.constant 0 : i32
    %c0_i32_0 = arith.constant 0 : i32
    %c0_i32_1 = arith.constant 0 : i32
    return %arg0, %c0_i32, %c0_i32_0 : i32, i32, i32
  }
  func.func @transform_1(%arg0: i32) -> (i32, i32, i32) {
    %c0_i32 = arith.constant 0 : i32
    %c0_i32_0 = arith.constant 0 : i32
    %c0_i32_1 = arith.constant 0 : i32
    return %arg0, %c0_i32, %c0_i32_0 : i32, i32, i32
  }
  func.func @transform_2(%arg0: i32) -> (i32, i32, i32) {
    %c0_i32 = arith.constant 0 : i32
    %c0_i32_0 = arith.constant 0 : i32
    %c0_i32_1 = arith.constant 0 : i32
    return %arg0, %c0_i32, %c0_i32_0 : i32, i32, i32
  }
  func.func @transform_3(%arg0: i32) -> (i32, i32) {
    %c0_i32 = arith.constant 0 : i32
    %c0_i32_0 = arith.constant 0 : i32
    %c0_i32_1 = arith.constant 0 : i32
    return %c0_i32, %c0_i32_0 : i32, i32
  }
  func.func @transform_4(%arg0: i32) -> (i32, i32) {
    %c0_i32 = arith.constant 0 : i32
    %c0_i32_0 = arith.constant 0 : i32
    %c0_i32_1 = arith.constant 0 : i32
    return %c0_i32, %c0_i32_0 : i32, i32
  }
  func.func @transform_5(%arg0: i32) -> (i32, i32) {
    %c0_i32 = arith.constant 0 : i32
    %c0_i32_0 = arith.constant 0 : i32
    %c0_i32_1 = arith.constant 0 : i32
    return %c0_i32, %c0_i32_0 : i32, i32
  }
  func.func @transform_6(%arg0: i32) -> (i32, i32) {
    %c0_i32 = arith.constant 0 : i32
    %c0_i32_0 = arith.constant 0 : i32
    %c0_i32_1 = arith.constant 0 : i32
    return %c0_i32, %c0_i32_0 : i32, i32
  }
  func.func @transform_7(%arg0: i32) -> (i32, i32, i32) {
    %c0_i32 = arith.constant 0 : i32
    %c0_i32_0 = arith.constant 0 : i32
    %c0_i32_1 = arith.constant 0 : i32
    return %arg0, %c0_i32, %c0_i32_0 : i32, i32, i32
  }
}

</mosaic_0001>

<bundles_post_ra>
// kernel: dpo_forward.3
= control target key start
LH: loop header
LB: loop body
LE: loop exit
PB: predicated region body
PF: predicated region fallthrough
CT: control target
= control target key end

     0   :  { %v768_v0 = vmov 0   ;;  %v31_v13 = vlaneseq  ;;  %v769_v19 = vmov 1.0|1.0   ;;  %vm193_vm6 = vcmask 261120   ;;  %s934_s0 = inlined_call_operand.vmem [shape: s32[1,28,1], index: 0, kind: input, shape index: {}]   ;;  %s935_s3 = inlined_call_operand.vmem [shape: bf16[128,32], index: 3, kind: input, shape index: {}]   ;;  %s936_s4 = inlined_call_operand.vmem [shape: bf16[32,32], index: 4, kind: input, shape index: {}]   ;;  %s937_s6 = inlined_call_operand.vmem [shape: bf16[32,128], index: 6, kind: input, shape index: {}]   ;;  %s938_s5 = inlined_call_operand.vmem [shape: f32[1,32], index: 5, kind: input, shape index: {}]   ;;  %s939_s1 = inlined_call_operand.vmem [shape: s32[1,28,1], index: 1, kind: input, shape index: {}]   ;;  %s940_s2 = inlined_call_operand.vmem [shape: f32[1,28,1], index: 2, kind: input, shape index: {}]   ;;  %s941_s7 = inlined_call_operand.vmem [shape: f32[1,4,1], index: 7, kind: output, shape index: {}]  }
   0x1   :  { %729 = vset.pattern.permute.xlu1 %v768_v0  ;;  %728 = vset.pattern.permute.xlu0 %v768_v0  ;;  %v29_v1 = vld [vmem:[%s934_s0 + $0x10] sm:$0xff]  ;;  %v27_v2 = vld [vmem:[%s934_s0] sm:$0xff]  ;;  %v30_v3 = vld [vmem:[%s934_s0 + $0x18] sm:$0xf]  ;;  %vm364_vm7 = vcmask 1043456   ;;  %vm771_vm12 = vmmov 0  }
   0x2   :  { %40 = vperm.xlu1 %729, %v29_v1   ;;  %34 = vperm.xlu0 %728, %v27_v2   ;;  %v28_v4 = vld [vmem:[%s934_s0 + $0x8] sm:$0xff]  ;;  %v730_v5 = vld [vmem:[%s935_s3 + $0x38] sm:$0xff]   ;;  %v731_v6 = vld [vmem:[%s935_s3 + $0x30] sm:$0xff]   ;;  %v849_v16 = vand.u32 127, %v31_v13 }
   0x3   :  { %666 = vmatprep.subr.bf16.mxu0 %v730_v5  ;;  %v732_v7 = vld [vmem:[%s935_s3 + $0x28] sm:$0xff]   ;;  %v733_v8 = vld [vmem:[%s935_s3 + $0x20] sm:$0xff]   ;;  %v734_v9 = vld [vmem:[%s935_s3 + $0x18] sm:$0xff]  }
   0x4   :  { %667 = vmatpush3.bf16.msra.mxu0 %v730_v5  ;;  %v735_v10 = vld [vmem:[%s935_s3 + $0x10] sm:$0xff]   ;;  %v736_v11 = vld [vmem:[%s935_s3 + $0x8] sm:$0xff]   ;;  %v737_v12 = vld [vmem:[%s935_s3] sm:$0xff]  }
   0x5   :  { %668 = vmatprep.subr.bf16.mxu0 %v731_v6  ;;  %v738_v20 = vld [vmem:[%s936_s4 + $0x8] sm:$0xff]   ;;  %v739_v21 = vld [vmem:[%s936_s4] sm:$0xff]  }
   0x6   :  { %43 = vperm.xlu1 %729, %v30_v3   ;;  %37 = vperm.xlu0 %728, %v28_v4   ;;  %v740_v28 = vld [vmem:[%s937_s6 + $0x8] sm:$0xff]   ;;  %v741_v29 = vld [vmem:[%s937_s6] sm:$0xff]  }
   0x7   :  { %686 = vmatprep.subr.bf16.mxu1 %v738_v20  ;;  %v625_v30 = vld [vmem:[%s938_s5] ss:$0 sm:$0xff] }
   0x8   :  { %669 = vmatpush3.bf16.msra.mxu0 %v731_v6  ;;  %687 = vmatpush3.bf16.msra.mxu1 %v738_v20  ;;  %v404_v20 = vld [vmem:[%s939_s1 + $0x18] sm:$0xf] }
   0x9   :  { %670 = vmatprep.subr.bf16.mxu0 %v732_v7  ;;  %688 = vmatprep.subr.bf16.mxu1 %v739_v21 }
   0xc   :  { %671 = vmatpush3.bf16.msra.mxu0 %v732_v7  ;;  %689 = vmatpush3.bf16.msra.mxu1 %v739_v21  ;;  %v402_v21 = vld [vmem:[%s939_s1 + $0x8] sm:$0xff] }
   0xd   :  { %672 = vmatprep.subr.bf16.mxu0 %v733_v8  ;;  %694 = vmatprep.subr.bf16.mxu1 %v740_v28 }
  0x10   :  { %673 = vmatpush3.bf16.msra.mxu0 %v733_v8 }
  0x11   :  { %674 = vmatprep.subr.bf16.mxu0 %v734_v9 }
  0x14   :  { %675 = vmatpush3.bf16.msra.mxu0 %v734_v9 }
  0x15   :  { %676 = vmatprep.subr.bf16.mxu0 %v735_v10 }
  0x18   :  { %677 = vmatpush3.bf16.msra.mxu0 %v735_v10 }
  0x19   :  { %678 = vmatprep.subr.bf16.mxu0 %v736_v11 }
  0x1c   :  { %679 = vmatpush3.bf16.msra.mxu0 %v736_v11 }
  0x1d   :  { %680 = vmatprep.subr.bf16.mxu0 %v737_v12 }
  0x20   :  { %681 = vmatpush3.bf16.msra.mxu0 %v737_v12 }
  0x7d   :  { %v41_v14 = vpop.permute.xlu1 %40  ;;  %v35_v15 = vpop.permute.xlu0 %34 }
  0x7e   :  { %vm47_vm0 = vcmp.eq.s32.totalorder %v849_v16, %v41_v14  ;;  %vm45_vm3 = vcmp.eq.s32.totalorder %v849_v16, %v35_v15 }
  0x81   :  { %v44_v17 = vpop.permute.xlu1 %43  ;;  %v38_v18 = vpop.permute.xlu0 %37 }
  0x82   :  { %vm48_vm1 = vcmp.eq.s32.totalorder %v849_v16, %v44_v17  ;;  %vm46_vm2 = vcmp.eq.s32.totalorder %v849_v16, %v38_v18 }
  0x83   :  { %vm623_vm4 = vmpackc.low %vm48_vm1, %vm47_vm0  ;;  %vm454_vm0 = vcmask 228352   ;;  %vm607_vm1 = vcmask 3072  }
  0x84   :  { %vm621_vm5 = vmpackc.low %vm46_vm2, %vm45_vm3 }
  0x85   :  { %682 = vmatprep.mubr.msk.bf16.mxu0 %vm621_vm5, %v769_v19 }
  0x86   :  { %683 = vmatmul.mubr.msk.bf16.vlgmr.msra.gmra.mxu0 %vm623_vm4, %v769_v19 }
 0x146   :  { %v684_v22 = vpop.f32.mrf.mxu0 }
 0x148   :  { %v153_v23 = vpop.f32.mrf.mxu0 }
 0x14a   :  { %v685_v24 = vpop.f32.mrf.mxu0 }
 0x14b   :  { %v169_v27 = vpack.c.bf16 %v685_v24, %v684_v22  ;;  %v401_v22 = vld [vmem:[%s939_s1] sm:$0xff] }
 0x14c   :  { %v156_v25 = vpop.f32.mrf.mxu0 }
 0x14d   :  { %v168_v26 = vpack.c.bf16 %v156_v25, %v153_v23  ;;  %v403_v23 = vld [vmem:[%s939_s1 + $0x10] sm:$0xff] }
 0x14f   :  { %690 = vmatprep.mubr.msk.bf16.mxu1 %vm193_vm6, %v168_v26 }
 0x150   :  { %691 = vmatmul.mubr.msk.bf16.vlgmr.msra.gmra.mxu1 %vm193_vm6, %v169_v27 }
 0x151   :  { %695 = vmatpush3.bf16.msra.mxu1 %v740_v28 }
 0x152   :  { %696 = vmatprep.subr.bf16.mxu1 %v741_v29 }
 0x155   :  { %697 = vmatpush3.bf16.msra.mxu1 %v741_v29 }
 0x210   :  { %v692_v31 = vpop.f32.mrf.mxu1 }
 0x211   :  { %v243_v32 = vadd.f32 %v692_v31, %v625_v30 }
 0x212   :  { %v234_v33 = vpop.f32.mrf.mxu1 }
 0x213   :  { %v251_v34 = vmul.f32 %v243_v32, %v243_v32  ;;  %v235_v35 = vadd.f32 %v625_v30, %v234_v33 }
 0x214   :  { %v693_v36 = vpop.f32.mrf.mxu1 }
 0x215   :  { %v255_v37 = vmul.f32 %v251_v34, %v243_v32  ;;  %v249_v38 = vmul.f32 %v235_v35, %v235_v35  ;;  %v246_v39 = vadd.f32 %v693_v36, %v625_v30 }
 0x216   :  { %v237_v40 = vpop.f32.mrf.mxu1 }
 0x217   :  { %v259_v41 = vmul.f32 0.044715, %v255_v37  ;;  %v253_v42 = vmul.f32 %v249_v38, %v235_v35  ;;  %v252_v43 = vmul.f32 %v246_v39, %v246_v39  ;;  %v238_v44 = vadd.f32 %v625_v30, %v237_v40 }
 0x219   :  { %v263_v45 = vadd.f32 %v259_v41, %v243_v32  ;;  %v257_v46 = vmul.f32 0.044715, %v253_v42  ;;  %v256_v47 = vmul.f32 %v252_v43, %v246_v39  ;;  %v250_v48 = vmul.f32 %v238_v44, %v238_v44 }
 0x21b   :  { %v267_v49 = vmul.f32 0.7978846, %v263_v45  ;;  %v261_v50 = vadd.f32 %v257_v46, %v235_v35  ;;  %v260_v51 = vmul.f32 0.044715, %v256_v47  ;;  %v254_v52 = vmul.f32 %v250_v48, %v238_v44 }
 0x21d   :  { %v265_v53 = vmul.f32 0.7978846, %v261_v50  ;;  %v264_v54 = vadd.f32 %v260_v51, %v246_v39  ;;  %v258_v55 = vmul.f32 0.044715, %v254_v52  ;;  %742 = vtanh.f32 %v267_v49 }
 0x21e   :  { %v770_v50 = vmov 0.0  }
 0x21f   :  { %744 = vtanh.f32 %v265_v53  ;;  %v268_v56 = vmul.f32 0.7978846, %v264_v54  ;;  %v262_v57 = vadd.f32 %v258_v55, %v238_v44  ;;  %702 = vmatprep.subr.mxu1 %v770_v50 }
 0x221   :  { %746 = vtanh.f32 %v268_v56  ;;  %v266_v58 = vmul.f32 0.7978846, %v262_v57  ;;  %v447_v57 = vshrl.u32 %v31_v13, 7  ;;  %v436_v13 = vld [vmem:[%s940_s2 + $0x10] sm:$0xff] }
 0x223   :  { %748 = vtanh.f32 %v266_v58 }
 0x22a   :  { %v743_v59 = vpop.eup %742 }
 0x22b   :  { %v275_v63 = vadd.f32 1.0, %v743_v59 }
 0x22c   :  { %v745_v60 = vpop.eup %744 }
 0x22d   :  { %v273_v61 = vadd.f32 1.0, %v745_v60  ;;  %v279_v5 = vmul.f32 0.5, %v275_v63 }
 0x22e   :  { %v747_v62 = vpop.eup %746 }
 0x22f   :  { %v276_v0 = vadd.f32 1.0, %v747_v62  ;;  %v277_v2 = vmul.f32 0.5, %v273_v61  ;;  %v283_v10 = vmul.f32 %v279_v5, %v243_v32  ;;  %v448_v61 = vmul.u32 7, %v447_v57 }
 0x230   :  { %v749_v1 = vpop.eup %748 }
 0x231   :  { %v280_v3 = vmul.f32 0.5, %v276_v0  ;;  %v274_v4 = vadd.f32 1.0, %v749_v1  ;;  %v281_v8 = vmul.f32 %v277_v2, %v235_v35  ;;  %v437_v2 = vld [vmem:[%s940_s2 + $0x18] sm:$0xf]  ;;  %vm449_vm13 = vcmp.ge.s32.totalorder %v849_v16, %v448_v61 }
 0x233   :  { %v278_v6 = vmul.f32 0.5, %v274_v4  ;;  %v284_v7 = vmul.f32 %v280_v3, %v246_v39 }
 0x235   :  { %v282_v9 = vmul.f32 %v278_v6, %v238_v44  ;;  %v286_v12 = vpack.c.bf16 %v284_v7, %v283_v10  ;;  %v450_v6 = vadd.s32 7, %v448_v61 }
 0x237   :  { %v285_v11 = vpack.c.bf16 %v282_v9, %v281_v8  ;;  %vm451_vm14 = vcmp.lt.s32.totalorder %v849_v16, %v450_v6 }
 0x238   :  { %vm452_vm15 = vmand %vm449_vm13, %vm451_vm14 }
 0x239   :  { %698 = vmatprep.mubr.msk.bf16.mxu1 %vm193_vm6, %v285_v11  ;;  %v435_v11 = vld [vmem:[%s940_s2 + $0x8] sm:$0xff] }
 0x23a   :  { %699 = vmatmul.mubr.msk.bf16.vlgmr.msra.gmra.mxu1 %vm193_vm6, %v286_v12 }
 0x23b   :  { %710 = vmatprep.mubr.msk.f32.mxu1 %vm771_vm12, %v770_v50 }
 0x2fa   :  { %v700_v14 = vpop.f32.mrf.mxu1 }
 0x2fb   :  { %362 = vmax.xlane.f32.xlu1 %v700_v14 }
 0x2fc   :  { %v343_v15 = vpop.f32.mrf.mxu1 }
 0x2fe   :  { %v701_v17 = vpop.f32.mrf.mxu1 }
 0x2ff   :  { %v365_v18 = vsel %vm364_vm7, %v701_v17, -inf }
 0x300   :  { %366 = vmax.xlane.f32.xlu0 %v365_v18  ;;  %v346_v19 = vpop.f32.mrf.mxu1 }
 0x304   :  { %360 = vmax.xlane.f32.xlu0 %v346_v19 }
 0x308   :  { %358 = vmax.xlane.f32.xlu0 %v343_v15 }
 0x30c   :  { %415 = vperm.xlu1 %729, %v404_v20  }
 0x310   :  { %409 = vperm.xlu1 %729, %v402_v21  }
 0x314   :  { %406 = vperm.xlu1 %729, %v401_v22  }
 0x31e   :  { %412 = vperm.xlu0 %728, %v403_v23  }
 0x384   :  { %v363_v24 = vpop.xlane.xlu1 %362 }
 0x385   :  { %v370_v25 = vsub.f32 %v700_v14, %v363_v24 }
 0x387   :  { %v376_v26 = vmul.f32 1.442695, %v370_v25 }
 0x388   :  { %v416_v33 = vpop.permute.xlu1 %415 }
 0x389   :  { %750 = vpow2.f32 %v376_v26  ;;  %v367_v27 = vpop.xlane.xlu0 %366  ;;  %vm420_vm8 = vcmp.eq.s32.totalorder %v849_v16, %v416_v33 }
 0x38a   :  { %v371_v28 = vsub.f32 %v701_v17, %v367_v27  ;;  %v424_v38 = vsel %vm420_vm8, %v701_v17, 0.0 }
 0x38b   :  { %v431_v40 = vsel %vm364_vm7, %v424_v38, 0.0 }
 0x38c   :  { %v378_v29 = vmul.f32 1.442695, %v371_v28  ;;  %v410_v39 = vpop.permute.xlu1 %409 }
 0x38d   :  { %v887_v30 = vpop.xlane.xlu0 %360  ;;  %vm418_vm9 = vcmp.eq.s32.totalorder %v849_v16, %v410_v39 }
 0x38e   :  { %752 = vpow2.f32 %v378_v29  ;;  %v369_v31 = vsub.f32 %v346_v19, %v887_v30  ;;  %v422_v43 = vsel %vm418_vm9, %v346_v19, 0.0  ;;  %v434_v19 = vld [vmem:[%s940_s2] sm:$0xff] }
 0x390   :  { %v374_v32 = vmul.f32 1.442695, %v369_v31  ;;  %v407_v47 = vpop.permute.xlu1 %406 }
 0x391   :  { %v890_v34 = vpop.xlane.xlu0 %358  ;;  %vm417_vm11 = vcmp.eq.s32.totalorder %v849_v16, %v407_v47 }
 0x392   :  { %754 = vpow2.f32 %v374_v32  ;;  %v368_v35 = vsub.f32 %v343_v15, %v890_v34  ;;  %v421_v49 = vsel %vm417_vm11, %v343_v15, 0.0 }
 0x394   :  { %v372_v36 = vmul.f32 1.442695, %v368_v35 }
 0x396   :  { %v751_v37 = vpop.eup %750  ;;  %756 = vpow2.f32 %v372_v36 }
 0x397   :  { %384 = vadd.xlane.f32.xlu1 %v751_v37 }
 0x399   :  { %v413_v45 = vpop.permute.xlu0 %412 }
 0x39a   :  { %vm419_vm10 = vcmp.eq.s32.totalorder %v849_v16, %v413_v45  ;;  %v453_v16 = vsel %vm452_vm15, 1.0, %v770_v50 }
 0x39b   :  { %v753_v41 = vpop.eup %752  ;;  %432 = vadd.xlane.f32.xlu1 %v431_v40  ;;  %v423_v48 = vsel %vm419_vm10, %v700_v14, 0.0 }
 0x39c   :  { %v386_v42 = vsel %vm364_vm7, %v753_v41, 0.0 }
 0x39d   :  { %387 = vadd.xlane.f32.xlu0 %v386_v42 }
 0x39f   :  { %v755_v44 = vpop.eup %754  ;;  %427 = vadd.xlane.f32.xlu1 %v422_v43 }
 0x3a1   :  { %382 = vadd.xlane.f32.xlu0 %v755_v44 }
 0x3a3   :  { %v757_v46 = vpop.eup %756 }
 0x3a5   :  { %380 = vadd.xlane.f32.xlu0 %v757_v46 }
 0x3a9   :  { %429 = vadd.xlane.f32.xlu0 %v423_v48 }
 0x3ad   :  { %425 = vadd.xlane.f32.xlu0 %v421_v49 }
 0x420   :  { %v385_v51 = vpop.xlane.xlu1 %384 }
 0x421   :  { %758 = vlog2.f32 %v385_v51 }
 0x424   :  { %v433_v62 = vpop.xlane.xlu1 %432 }
 0x426   :  { %v388_v52 = vpop.xlane.xlu0 %387 }
 0x427   :  { %760 = vlog2.f32 %v388_v52 }
 0x428   :  { %v428_v10 = vpop.xlane.xlu1 %427 }
 0x42a   :  { %v383_v53 = vpop.xlane.xlu0 %382 }
 0x42b   :  { %762 = vlog2.f32 %v383_v53 }
 0x42e   :  { %v759_v54 = vpop.eup %758  ;;  %v381_v55 = vpop.xlane.xlu0 %380 }
 0x42f   :  { %764 = vlog2.f32 %v381_v55  ;;  %v394_v56 = vmul.f32 0.6931472, %v759_v54 }
 0x431   :  { %v399_v60 = vadd.f32 %v394_v56, %v363_v24 }
 0x432   :  { %v430_v63 = vpop.xlane.xlu0 %429 }
 0x433   :  { %v440_v5 = vsub.f32 %v430_v63, %v399_v60 }
 0x434   :  { %v761_v58 = vpop.eup %760 }
 0x435   :  { %v396_v59 = vmul.f32 0.6931472, %v761_v58  ;;  %v444_v15 = vmul.f32 %v440_v5, %v436_v13 }
 0x436   :  { %v426_v20 = vpop.xlane.xlu0 %425 }
 0x437   :  { %v400_v0 = vadd.f32 %v396_v59, %v367_v27 }
 0x438   :  { %v763_v1 = vpop.eup %762 }
 0x439   :  { %v441_v3 = vsub.f32 %v433_v62, %v400_v0  ;;  %v392_v4 = vmul.f32 0.6931472, %v763_v1 }
 0x43b   :  { %v398_v7 = vadd.f32 %v392_v4, %v887_v30  ;;  %v445_v8 = vmul.f32 %v441_v3, %v437_v2 }
 0x43c   :  { %v765_v9 = vpop.eup %764 }
 0x43d   :  { %v439_v12 = vsub.f32 %v428_v10, %v398_v7  ;;  %v390_v14 = vmul.f32 0.6931472, %v765_v9  ;;  %703 = vmatpush3.msk.msra.mxu1 %vm364_vm7, %v445_v8 }
 0x43e   :  { %704 = vmatprep.subr.mxu1 %v770_v50 }
 0x43f   :  { %v397_v17 = vadd.f32 %v390_v14, %v890_v34  ;;  %705 = vmatpush3.msra.mxu1 %v444_v15  ;;  %v443_v18 = vmul.f32 %v439_v12, %v435_v11 }
 0x440   :  { %706 = vmatprep.subr.mxu1 %v770_v50 }
 0x441   :  { %v438_v21 = vsub.f32 %v426_v20, %v397_v17  ;;  %707 = vmatpush3.msra.mxu1 %v443_v18 }
 0x442   :  { %708 = vmatprep.subr.mxu1 %v770_v50 }
 0x443   :  { %v442_v22 = vmul.f32 %v438_v21, %v434_v19 }
 0x445   :  { %709 = vmatpush3.msra.mxu1 %v442_v22 }
 0x446   :  { %711 = vmatmul.mubr.msk.f32.vlgmr.msra.gmra.mxu1 %vm454_vm0, %v453_v16  ;;  %713 = vmatprep.subr.mxu1 %v770_v50 }
 0x447   :  { %714 = vmatpush3.msk.msra.mxu1 %vm364_vm7, %v437_v2  ;;  %721 = vmatprep.mubr.msk.f32.mxu1 %vm771_vm12, %v770_v50 }
 0x448   :  { %715 = vmatprep.subr.mxu1 %v770_v50 }
 0x449   :  { %716 = vmatpush3.msra.mxu1 %v436_v13 }
 0x44a   :  { %717 = vmatprep.subr.mxu1 %v770_v50 }
 0x44b   :  { %718 = vmatpush3.msra.mxu1 %v435_v11 }
 0x44c   :  { %719 = vmatprep.subr.mxu1 %v770_v50 }
 0x44d   :  { %720 = vmatpush3.msra.mxu1 %v434_v19 }
 0x44e   :  { %722 = vmatmul.mubr.msk.f32.vlgmr.msra.gmra.mxu1 %vm454_vm0, %v453_v16 }
 0x506   :  { %v527_v23 = vpop.f32.mrf.mxu1 }
 0x508   :  { %v712_v24 = vpop.f32.mrf.mxu1 }
 0x50e   :  { %v600_v25 = vpop.f32.mrf.mxu1 }
 0x50f   :  { %v604_v26 = vmax.f32 %v600_v25, 1e-05 }
 0x510   :  { %v723_v27 = vpop.f32.mrf.mxu1 }
 0x511   :  { %766 = vrcp.f32 %v604_v26 }
 0x51e   :  { %v767_v28 = vpop.eup %766 }
 0x51f   :  { %v606_v29 = vmul.f32 %v767_v28, %v527_v23 }
 0x521   :  { %608 = vst.msk [vmem:[%s941_s7] sm:$0xf] %vm607_vm1, %v606_v29 }

</bundles_post_ra>
